<compile_context>
chip_gen: v6e
topology: v6e:2x2x1
jax: 0.10.0
libtpu: 0.0.40
codegen_flags: <defaults>
</compile_context>

<pallas_src>
import functools

import jax
import jax.numpy as jnp
from jax.experimental import pallas as pl
from jax.experimental.pallas import tpu as pltpu


_DEFAULT_TILE_B = 8192              # rows per grid step (multiple of 128)
_VMEM_LIMIT_BYTES = 48 * 1024 * 1024  # ~25-28 MiB actually used at tile 8192


def _round_up(n, m):
    return ((n + m - 1) // m) * m


def _mlp_kernel(x_ref, w1_ref, b1_ref, w2_ref, b2_ref, w3_ref, b3_ref, o_ref):
    """One (TILE_B, 45) batch tile: 3 MXU matmuls + VPU bias/ReLU + EUP sigmoid."""
    # x streamed as f32; cast to bf16 in VMEM (no separate HBM convert pass).
    x = x_ref[...].astype(jnp.bfloat16)                                   # (T, 45)
    # Layer 1: 45 -> 128 on the MXU with f32 accumulation; bias + ReLU on VPU.
    h1 = jnp.dot(x, w1_ref[...], preferred_element_type=jnp.float32)     # (T, 128)
    h1 = jnp.maximum(h1 + b1_ref[...], 0.0)
    # Layer 2: 128 -> 32 on the MXU (bf16 operands, f32 accumulate); ReLU.
    h2 = jnp.dot(h1.astype(jnp.bfloat16), w2_ref[...],
                 preferred_element_type=jnp.float32)                     # (T, 32)
    h2 = jnp.maximum(h2 + b2_ref[...], 0.0)
    # Layer 3 computed transposed so the result is lane-dense:
    #   (1, 32) . (T, 32)^T -> (1, T)   (same contraction pattern as q @ k^T).
    z = jnp.einsum("ok,tk->ot", w3_ref[...], h2.astype(jnp.bfloat16),
                   preferred_element_type=jnp.float32)                   # (1, T)
    o_ref[...] = jax.nn.sigmoid(z + b3_ref[...])                         # sigmoid_


@functools.partial(jax.jit, static_argnames=("tile_b",))
def disulfide_bond_site_nn(x, w1, b1, w2, b2, w3, b3, *, tile_b=_DEFAULT_TILE_B):
    """Forward pass.

    x:  (B, 45) float32 distance vectors.
    w*: weights stored as (in, out); b*: (1, out) biases (float32).
    Returns (B, 1) float32 sigmoid probabilities.
    """
    B = x.shape[0]
    x = x.astype(jnp.float32)

    # Tile sizing: multiple of 128 (lane-dense output / bf16-safe sublanes),
    # capped so mid-size batches produce >= 2 tiles (keeps both v7x TCs busy).
    tile_b = max(128, min(tile_b, _round_up((B + 1) // 2, 128)))
    num_tiles = pl.cdiv(B, tile_b)          # partial last block handled by Pallas

    # Tiny resident operands (DMA'd once, stay in VMEM across the grid).
    w1_bf = w1.astype(jnp.bfloat16)                    # (45, 128)
    w2_bf = w2.astype(jnp.bfloat16)                    # (128, 32)
    w3_bf = w3.reshape(1, -1).astype(jnp.bfloat16)     # (1, 32) row
    b1_f = b1.reshape(1, -1).astype(jnp.float32)       # (1, 128)
    b2_f = b2.reshape(1, -1).astype(jnp.float32)       # (1, 32)
    b3_f = b3.reshape(1, 1).astype(jnp.float32)        # (1, 1)

    def resident(arr):  # same block every grid step -> stays in VMEM
        return pl.BlockSpec(arr.shape, lambda i: (0, 0))

    flops = 2 * B * (45 * 128 + 128 * 32 + 32)
    bytes_accessed = (B * 45 * 4 + B * 4
                      + (w1_bf.size + w2_bf.size + w3_bf.size) * 2
                      + (b1_f.size + b2_f.size + b3_f.size) * 4)

    out = pl.pallas_call(
        _mlp_kernel,
        out_shape=jax.ShapeDtypeStruct((1, num_tiles * tile_b), jnp.float32),
        grid=(num_tiles,),
        in_specs=[
            pl.BlockSpec((tile_b, 45), lambda i: (i, 0)),   # x: streamed f32
            resident(w1_bf), resident(b1_f),                # layer 1
            resident(w2_bf), resident(b2_f),                # layer 2
            resident(w3_bf), resident(b3_f),                # layer 3
        ],
        # Lane-dense output: each tile writes a contiguous (1, tile_b) span.
        out_specs=pl.BlockSpec((1, tile_b), lambda i: (0, i)),
        compiler_params=pltpu.CompilerParams(
            # v7x: shard batch tiles across both TensorCores (no-op v5e/v6e).
            dimension_semantics=("parallel",),
            vmem_limit_bytes=_VMEM_LIMIT_BYTES,
        ),
        cost_estimate=pl.CostEstimate(
            flops=flops, transcendentals=B, bytes_accessed=bytes_accessed),
    )(x, w1_bf, b1_f, w2_bf, b2_f, w3_bf, b3_f)

    # Drop garbage lanes from the partial last tile; back to (B, 1).
    return out[0, :B, None]


def init_params(key):
    """Deterministic init mimicking nn.Linear's U(-1/sqrt(fan_in), 1/sqrt(fan_in))."""
    def linear(key, fan_in, fan_out):
        kw, kb = jax.random.split(key)
        bound = 1.0 / (fan_in ** 0.5)
        # stored as (in, out) so the kernel computes x @ W + b
        w = jax.random.uniform(kw, (fan_in, fan_out), jnp.float32, -bound, bound)
        b = jax.random.uniform(kb, (1, fan_out), jnp.float32, -bound, bound)
        return w, b

    k1, k2, k3 = jax.random.split(key, 3)
    w1, b1 = linear(k1, 45, 128)
    w2, b2 = linear(k2, 128, 32)
    w3, b3 = linear(k3, 32, 1)
    return w1, b1, w2, b2, w3, b3


def _reference(x, w1, b1, w2, b2, w3, b3):
    h1 = jnp.maximum(x @ w1 + b1, 0.0)
    h2 = jnp.maximum(h1 @ w2 + b2, 0.0)
    return jax.nn.sigmoid(h2 @ w3 + b3)


if __name__ == "__main__":
    key = jax.random.PRNGKey(0)
    k_params, k_x1, k_x2 = jax.random.split(key, 3)
    w1, b1, w2, b2, w3, b3 = init_params(k_params)

    # Case 1: tiny ragged batch (single partial tile).
    B1 = 13
    x1 = jax.random.normal(k_x1, (B1, 45), dtype=jnp.float32)
    y1 = jax.block_until_ready(disulfide_bond_site_nn(x1, w1, b1, w2, b2, w3, b3))
    ref1 = _reference(x1, w1, b1, w2, b2, w3, b3)
    assert y1.shape == (B1, 1)
    assert jnp.allclose(y1, ref1, atol=2e-2), float(jnp.max(jnp.abs(y1 - ref1)))

    # Case 2: multi-tile grid with a partial last block (no wrapper-side pad).
    B2 = 300
    x2 = jax.random.normal(k_x2, (B2, 45), dtype=jnp.float32)
    y2 = jax.block_until_ready(disulfide_bond_site_nn(x2, w1, b1, w2, b2, w3, b3))
    ref2 = _reference(x2, w1, b1, w2, b2, w3, b3)
    assert y2.shape == (B2, 1)
    assert jnp.allclose(y2, ref2, atol=2e-2), float(jnp.max(jnp.abs(y2 - ref2)))

    print("KERNEL_OK")
</pallas_src>

<mosaic_0001>
module attributes {stable_mosaic.version = 11 : i64} {
  func.func @_mlp_kernel(%arg0: i32, %arg1: memref<128x45xf32, #tpu.memory_space<vmem>>, %arg2: memref<45x128xbf16, #tpu.memory_space<vmem>>, %arg3: memref<1x128xf32, #tpu.memory_space<vmem>>, %arg4: memref<128x32xbf16, #tpu.memory_space<vmem>>, %arg5: memref<1x32xf32, #tpu.memory_space<vmem>>, %arg6: memref<1x32xbf16, #tpu.memory_space<vmem>>, %arg7: memref<1x1xf32, #tpu.memory_space<vmem>>, %arg8: memref<1x128xf32, #tpu.memory_space<vmem>>) attributes {dimension_semantics = [#tpu.dimension_semantics<parallel>], iteration_bounds = array<i64: 1>, scalar_prefetch = 0 : i64, scratch_operands = 0 : i64, tpu.core_type = #tpu.core_type<tc>, window_params = [{transform_indices = @transform_0, window_bounds = array<i64: 128, 45>}, {pipeline_mode = #tpu.pipeline_mode<synchronous>, transform_indices = @transform_1, window_bounds = array<i64: 45, 128>}, {pipeline_mode = #tpu.pipeline_mode<synchronous>, transform_indices = @transform_2, window_bounds = array<i64: 1, 128>}, {pipeline_mode = #tpu.pipeline_mode<synchronous>, transform_indices = @transform_3, window_bounds = array<i64: 128, 32>}, {pipeline_mode = #tpu.pipeline_mode<synchronous>, transform_indices = @transform_4, window_bounds = array<i64: 1, 32>}, {pipeline_mode = #tpu.pipeline_mode<synchronous>, transform_indices = @transform_5, window_bounds = array<i64: 1, 32>}, {pipeline_mode = #tpu.pipeline_mode<synchronous>, transform_indices = @transform_6, window_bounds = array<i64: 1, 1>}, {transform_indices = @transform_7, window_bounds = array<i64: 1, 128>}]} {
    %c0 = arith.constant 0 : index
    %c0_0 = arith.constant 0 : index
    %0 = vector.load %arg1[%c0, %c0_0] : memref<128x45xf32, #tpu.memory_space<vmem>>, vector<128x45xf32>
    %1 = arith.truncf %0 : vector<128x45xf32> to vector<128x45xbf16>
    %c0_1 = arith.constant 0 : index
    %c0_2 = arith.constant 0 : index
    %2 = vector.load %arg2[%c0_1, %c0_2] : memref<45x128xbf16, #tpu.memory_space<vmem>>, vector<45x128xbf16>
    %cst = arith.constant dense<0.000000e+00> : vector<128x128xf32>
    %3 = tpu.matmul %1, %2, %cst {dimension_numbers = #tpu.dot_dimension_numbers<[1], [0], [0], [1], [0, 0, 1, 1], [], []>} : vector<128x45xbf16>, vector<45x128xbf16>, vector<128x128xf32> -> vector<128x128xf32>
    %c0_3 = arith.constant 0 : index
    %c0_4 = arith.constant 0 : index
    %4 = vector.load %arg3[%c0_3, %c0_4] : memref<1x128xf32, #tpu.memory_space<vmem>>, vector<1x128xf32>
    %5 = vector.broadcast %4 : vector<1x128xf32> to vector<128x128xf32>
    %6 = arith.addf %3, %5 : vector<128x128xf32>
    %cst_5 = arith.constant 0.000000e+00 : f32
    %7 = vector.broadcast %cst_5 : f32 to vector<128x128xf32>
    %8 = arith.maximumf %6, %7 : vector<128x128xf32>
    %9 = arith.truncf %8 : vector<128x128xf32> to vector<128x128xbf16>
    %c0_6 = arith.constant 0 : index
    %c0_7 = arith.constant 0 : index
    %10 = vector.load %arg4[%c0_6, %c0_7] : memref<128x32xbf16, #tpu.memory_space<vmem>>, vector<128x32xbf16>
    %cst_8 = arith.constant dense<0.000000e+00> : vector<128x32xf32>
    %11 = tpu.matmul %9, %10, %cst_8 {dimension_numbers = #tpu.dot_dimension_numbers<[1], [0], [0], [1], [0, 0, 1, 1], [], []>} : vector<128x128xbf16>, vector<128x32xbf16>, vector<128x32xf32> -> vector<128x32xf32>
    %c0_9 = arith.constant 0 : index
    %c0_10 = arith.constant 0 : index
    %12 = vector.load %arg5[%c0_9, %c0_10] : memref<1x32xf32, #tpu.memory_space<vmem>>, vector<1x32xf32>
    %13 = vector.broadcast %12 : vector<1x32xf32> to vector<128x32xf32>
    %14 = arith.addf %11, %13 : vector<128x32xf32>
    %cst_11 = arith.constant 0.000000e+00 : f32
    %15 = vector.broadcast %cst_11 : f32 to vector<128x32xf32>
    %16 = arith.maximumf %14, %15 : vector<128x32xf32>
    %c0_12 = arith.constant 0 : index
    %c0_13 = arith.constant 0 : index
    %17 = vector.load %arg6[%c0_12, %c0_13] : memref<1x32xbf16, #tpu.memory_space<vmem>>, vector<1x32xbf16>
    %18 = arith.truncf %16 : vector<128x32xf32> to vector<128x32xbf16>
    "tpu.trace_start"() <{level = 10 : i32, message = "ok,tk->ot"}> : () -> ()
    %cst_14 = arith.constant dense<0.000000e+00> : vector<1x128xf32>
    %19 = tpu.matmul %17, %18, %cst_14 {dimension_numbers = #tpu.dot_dimension_numbers<[1], [1], [0], [0], [0, 0, 1, 0], [], []>} : vector<1x32xbf16>, vector<128x32xbf16>, vector<1x128xf32> -> vector<1x128xf32>
    "tpu.trace_stop"() : () -> ()
    %c0_15 = arith.constant 0 : index
    %c0_16 = arith.constant 0 : index
    %20 = vector.load %arg7[%c0_15, %c0_16] : memref<1x1xf32, #tpu.memory_space<vmem>>, vector<1x1xf32>
    %21 = vector.broadcast %20 : vector<1x1xf32> to vector<1x128xf32>
    %22 = arith.addf %19, %21 : vector<1x128xf32>
    %23 = arith.negf %22 : vector<1x128xf32>
    %24 = math.exp %23 : vector<1x128xf32>
    %cst_17 = arith.constant 1.000000e+00 : f32
    %25 = vector.broadcast %cst_17 : f32 to vector<1x128xf32>
    %26 = arith.addf %25, %24 : vector<1x128xf32>
    %27 = arith.divf %25, %26 : vector<1x128xf32>
    %c0_18 = arith.constant 0 : index
    %c0_19 = arith.constant 0 : index
    %28 = vector.load %arg8[%c0_18, %c0_19] : memref<1x128xf32, #tpu.memory_space<vmem>>, vector<1x128xf32>
    tpu.vector_store %arg8[%c0_18, %c0_19], %27 {strides = array<i32>} : memref<1x128xf32, #tpu.memory_space<vmem>>, vector<1x128xf32>,
    return
  }
  func.func @transform_0(%arg0: i32) -> (i32, i32) {
    %c0_i32 = arith.constant 0 : i32
    %c0_i32_0 = arith.constant 0 : i32
    return %arg0, %c0_i32 : i32, i32
  }
  func.func @transform_1(%arg0: i32) -> (i32, i32) {
    %c0_i32 = arith.constant 0 : i32
    %c0_i32_0 = arith.constant 0 : i32
    %c0_i32_1 = arith.constant 0 : i32
    return %c0_i32, %c0_i32_0 : i32, i32
  }
  func.func @transform_2(%arg0: i32) -> (i32, i32) {
    %c0_i32 = arith.constant 0 : i32
    %c0_i32_0 = arith.constant 0 : i32
    %c0_i32_1 = arith.constant 0 : i32
    return %c0_i32, %c0_i32_0 : i32, i32
  }
  func.func @transform_3(%arg0: i32) -> (i32, i32) {
    %c0_i32 = arith.constant 0 : i32
    %c0_i32_0 = arith.constant 0 : i32
    %c0_i32_1 = arith.constant 0 : i32
    return %c0_i32, %c0_i32_0 : i32, i32
  }
  func.func @transform_4(%arg0: i32) -> (i32, i32) {
    %c0_i32 = arith.constant 0 : i32
    %c0_i32_0 = arith.constant 0 : i32
    %c0_i32_1 = arith.constant 0 : i32
    return %c0_i32, %c0_i32_0 : i32, i32
  }
  func.func @transform_5(%arg0: i32) -> (i32, i32) {
    %c0_i32 = arith.constant 0 : i32
    %c0_i32_0 = arith.constant 0 : i32
    %c0_i32_1 = arith.constant 0 : i32
    return %c0_i32, %c0_i32_0 : i32, i32
  }
  func.func @transform_6(%arg0: i32) -> (i32, i32) {
    %c0_i32 = arith.constant 0 : i32
    %c0_i32_0 = arith.constant 0 : i32
    %c0_i32_1 = arith.constant 0 : i32
    return %c0_i32, %c0_i32_0 : i32, i32
  }
  func.func @transform_7(%arg0: i32) -> (i32, i32) {
    %c0_i32 = arith.constant 0 : i32
    %c0_i32_0 = arith.constant 0 : i32
    return %c0_i32, %arg0 : i32, i32
  }
}

</mosaic_0001>

<bundles_post_ra>
// kernel: disulfide_bond_site_nn.1
= control target key start
LH: loop header
LB: loop body
LE: loop exit
PB: predicated region body
PF: predicated region fallthrough
CT: control target
= control target key end

     0   :  { %vm108_vm0 = vcmask 1045504   ;;  %vm109_vm1 = vcmask 1046528   ;;  %v671_v1 = vmov 65535   ;;  %vm83_vm2 = vcmask 367616   ;;  %s861_s1 = inlined_call_operand.vmem [shape: bf16[45,128], index: 1, kind: input, shape index: {}]   ;;  %s862_s0 = inlined_call_operand.vmem [shape: f32[13,45], index: 0, kind: input, shape index: {}]   ;;  %s863_s3 = inlined_call_operand.vmem [shape: bf16[128,32], index: 3, kind: input, shape index: {}]   ;;  %s864_s2 = inlined_call_operand.vmem [shape: f32[1,128], index: 2, kind: input, shape index: {}]   ;;  %s865_s6 = inlined_call_operand.<no memory space> [shape: f32[1,1], index: 6, kind: input, shape index: {}]   ;;  %s866_s4 = inlined_call_operand.vmem [shape: f32[1,32], index: 4, kind: input, shape index: {}]   ;;  %s867_s5 = inlined_call_operand.vmem [shape: bf16[1,32], index: 5, kind: input, shape index: {}]   ;;  %s868_s7 = inlined_call_operand.vmem [shape: f32[1,128], index: 7, kind: output, shape index: {}]  }
   0x1   :  { %v656_v0 = vld [vmem:[%s861_s1 + $0x10] sm:$0x7f]   ;;  %v110_v2 = vsel %vm108_vm0, 4294967295, %v671_v1  ;;  %v657_v5 = vld [vmem:[%s861_s1 + $0x8] sm:$0xff]   ;;  %v29_v6 = vld [vmem:[%s862_s0] sm:$0xff]  ;;  %vm673_vm3 = vmmov 0  }
   0x2   :  { %v111_v3 = vsel %vm109_vm1, %v110_v2, 0  ;;  %v30_v7 = vld [vmem:[%s862_s0 + $0x8] sm:$0xff]  ;;  %v658_v9 = vld [vmem:[%s861_s1] sm:$0xff]   ;;  %v31_v10 = vld [vmem:[%s862_s0 + $0x10] sm:$0xff]  ;;  %vm439_vm4 = vcmask 261120  }
   0x3   :  { %v113_v4 = vand.u32 %v656_v0, %v111_v3  ;;  %v45_v8 = vpack.c.bf16 %v30_v7, %v29_v6  ;;  %v32_v11 = vld [vmem:[%s862_s0 + $0x18] sm:$0xff]  ;;  %v33_v12 = vld [vmem:[%s862_s0 + $0x20] sm:$0xff]  ;;  %v34_v13 = vld [vmem:[%s862_s0 + $0x28] sm:$0xff] }
   0x4   :  { %v659_v14 = vld [vmem:[%s863_s3 + $0x38] sm:$0xff]   ;;  %v46_v15 = vpack.c.bf16 %v32_v11, %v31_v10  ;;  %v47_v16 = vpack.c.bf16 %v34_v13, %v33_v12  ;;  %v660_v17 = vld [vmem:[%s863_s3 + $0x30] sm:$0xff]   ;;  %v37_v20 = vld [vmem:[%s862_s0 + $0x40] sm:$0xff] }
   0x5   :  { %577 = vmatprep.subr.bf16.mxu1 %v113_v4  ;;  %583 = vmatprep.mubr.msk.bf16.mxu1 %vm83_vm2, %v45_v8  ;;  %v35_v18 = vld [vmem:[%s862_s0 + $0x30] sm:$0xff]  ;;  %v36_v19 = vld [vmem:[%s862_s0 + $0x38] sm:$0xff]  ;;  %v38_v21 = vld [vmem:[%s862_s0 + $0x48] sm:$0xff] }
   0x6   :  { %578 = vmatpush3.bf16.msra.mxu1 %v113_v4  ;;  %v661_v22 = vld [vmem:[%s863_s3 + $0x28] sm:$0xff]   ;;  %v48_v23 = vpack.c.bf16 %v36_v19, %v35_v18  ;;  %v49_v24 = vpack.c.bf16 %v38_v21, %v37_v20  ;;  %v662_v25 = vld [vmem:[%s863_s3 + $0x20] sm:$0xff]   ;;  %v39_v26 = vld [vmem:[%s862_s0 + $0x50] sm:$0xff] }
   0x7   :  { %579 = vmatprep.subr.bf16.mxu1 %v657_v5  ;;  %v40_v27 = vld [vmem:[%s862_s0 + $0x58] sm:$0xff]  ;;  %v41_v28 = vld [vmem:[%s862_s0 + $0x60] sm:$0xff]  ;;  %v42_v29 = vld [vmem:[%s862_s0 + $0x68] sm:$0xff] }
   0x8   :  { %v663_v30 = vld [vmem:[%s863_s3 + $0x18] sm:$0xff]   ;;  %v50_v31 = vpack.c.bf16 %v40_v27, %v39_v26  ;;  %v51_v32 = vpack.c.bf16 %v42_v29, %v41_v28  ;;  %v43_v33 = vld [vmem:[%s862_s0 + $0x70] sm:$0xff]  ;;  %v665_v37 = vld [vmem:[%s863_s3 + $0x8] sm:$0xff]  }
   0x9   :  { %v44_v34 = vld [vmem:[%s862_s0 + $0x78] sm:$0xff]  ;;  %v664_v36 = vld [vmem:[%s863_s3 + $0x10] sm:$0xff]   ;;  %v666_v38 = vld [vmem:[%s863_s3] sm:$0xff]  }
   0xa   :  { %580 = vmatpush3.bf16.msra.mxu1 %v657_v5  ;;  %v52_v35 = vpack.c.bf16 %v44_v34, %v43_v33  ;;  %v518_v41 = vld [vmem:[%s864_s2] ss:$0 sm:$0xff]  ;;  %v674_v33 = vmov 0   ;;  %v12_v34 = vstv %s865_s6 }
   0xb   :  { %581 = vmatprep.subr.bf16.mxu1 %v658_v9  ;;  %655 = vset.pattern.permute.xlu0 %v674_v33  ;;  %13 = vst [vmem:[#allocation2] sm:$0x1] %v12_v34 }
   0xe   :  { %582 = vmatpush3.bf16.msra.mxu1 %v658_v9 }
   0xf   :  { %599 = vmatprep.subr.bf16.mxu1 %v659_v14 }
  0x11   :  { %584 = vmatmul.mubr.msk.bf16.vlgmr.msra.gmra.mxu1 %vm83_vm2, %v46_v15 }
  0x12   :  { %587 = vmatprep.mubr.msk.bf16.mxu1 %vm83_vm2, %v47_v16  ;;  %600 = vmatpush3.bf16.msra.mxu1 %v659_v14 }
  0x13   :  { %601 = vmatprep.subr.bf16.mxu1 %v660_v17 }
  0x16   :  { %602 = vmatpush3.bf16.msra.mxu1 %v660_v17 }
  0x17   :  { %603 = vmatprep.subr.bf16.mxu1 %v661_v22 }
  0x19   :  { %588 = vmatmul.mubr.msk.bf16.gmra.mxu1 %vm83_vm2, %v48_v23 }
  0x1a   :  { %591 = vmatprep.mubr.msk.bf16.mxu1 %vm83_vm2, %v49_v24  ;;  %604 = vmatpush3.bf16.msra.mxu1 %v661_v22 }
  0x1b   :  { %605 = vmatprep.subr.bf16.mxu1 %v662_v25 }
  0x1e   :  { %606 = vmatpush3.bf16.msra.mxu1 %v662_v25 }
  0x1f   :  { %607 = vmatprep.subr.bf16.mxu1 %v663_v30 }
  0x21   :  { %592 = vmatmul.mubr.msk.bf16.gmra.mxu1 %vm83_vm2, %v50_v31 }
  0x22   :  { %595 = vmatprep.mubr.msk.bf16.mxu1 %vm83_vm2, %v51_v32  ;;  %608 = vmatpush3.bf16.msra.mxu1 %v663_v30  ;;  %v672_v32 = vmov 0.0  }
  0x23   :  { %609 = vmatprep.subr.bf16.mxu1 %v664_v36  ;;  %631 = vmatprep.subr.bf16.mxu0 %v672_v32 }
  0x24   :  { %647 = vmatprep.mubr.msk.bf16.mxu0 %vm673_vm3, %v672_v32 }
  0x26   :  { %610 = vmatpush3.bf16.msra.mxu1 %v664_v36 }
  0x27   :  { %611 = vmatprep.subr.bf16.mxu1 %v665_v37 }
  0x29   :  { %596 = vmatmul.mubr.msk.bf16.gmra.mxu1 %vm83_vm2, %v52_v35  ;;  %v429_v35 = vld [vmem:[#allocation2] sm:$0x1] }
  0x2a   :  { %612 = vmatpush3.bf16.msra.mxu1 %v665_v37  ;;  %432 = vperm.xlu0 %655, %v429_v35   ;;  %v815_v37 = vld [vmem:[%s866_s4] ss:$0 sm:$0xff] }
  0x2b   :  { %613 = vmatprep.subr.bf16.mxu1 %v666_v38 }
  0x2e   :  { %614 = vmatpush3.bf16.msra.mxu1 %v666_v38 }
  0xd1   :  { %v585_v39 = vpop.f32.mrf.mxu1 }
  0xd2   :  { %v158_v45 = vadd.f32 %v585_v39, %v518_v41 }
  0xd3   :  { %v149_v40 = vpop.f32.mrf.mxu1 }
  0xd4   :  { %v150_v43 = vadd.f32 %v518_v41, %v149_v40  ;;  %v214_v52 = vmax.f32 %v158_v45, 0.0 }
  0xd5   :  { %v586_v42 = vpop.f32.mrf.mxu1 }
  0xd6   :  { %v161_v44 = vadd.f32 %v586_v42, %v518_v41  ;;  %v212_v50 = vmax.f32 %v150_v43, 0.0 }
  0xd7   :  { %v152_v46 = vpop.f32.mrf.mxu1 }
  0xd8   :  { %v153_v47 = vadd.f32 %v518_v41, %v152_v46  ;;  %v215_v48 = vmax.f32 %v161_v44, 0.0 }
  0xd9   :  { %v589_v49 = vpop.f32.mrf.mxu1 }
  0xda   :  { %v213_v51 = vmax.f32 %v153_v47, 0.0  ;;  %v229_v55 = vpack.c.bf16 %v215_v48, %v214_v52  ;;  %v174_v59 = vadd.f32 %v589_v49, %v518_v41 }
  0xdb   :  { %v165_v53 = vpop.f32.mrf.mxu1 }
  0xdc   :  { %v228_v54 = vpack.c.bf16 %v213_v51, %v212_v50  ;;  %v166_v57 = vadd.f32 %v518_v41, %v165_v53  ;;  %v218_v2 = vmax.f32 %v174_v59, 0.0 }
  0xdd   :  { %v590_v56 = vpop.f32.mrf.mxu1 }
  0xde   :  { %v177_v58 = vadd.f32 %v590_v56, %v518_v41  ;;  %615 = vmatprep.mubr.bf16.mxu1 %v228_v54  ;;  %v216_v0 = vmax.f32 %v166_v57, 0.0 }
  0xdf   :  { %v168_v60 = vpop.f32.mrf.mxu1  ;;  %616 = vmatmul.mubr.bf16.vlgmr.msra.gmra.mxu1 %v229_v55 }
  0xe0   :  { %v169_v61 = vadd.f32 %v518_v41, %v168_v60  ;;  %v219_v62 = vmax.f32 %v177_v58, 0.0 }
  0xe1   :  { %v593_v63 = vpop.f32.mrf.mxu1 }
  0xe2   :  { %v217_v1 = vmax.f32 %v169_v61, 0.0  ;;  %v231_v5 = vpack.c.bf16 %v219_v62, %v218_v2  ;;  %v190_v9 = vadd.f32 %v593_v63, %v518_v41 }
  0xe3   :  { %v181_v3 = vpop.f32.mrf.mxu1 }
  0xe4   :  { %v230_v4 = vpack.c.bf16 %v217_v1, %v216_v0  ;;  %v182_v7 = vadd.f32 %v518_v41, %v181_v3  ;;  %v222_v16 = vmax.f32 %v190_v9, 0.0 }
  0xe5   :  { %v594_v6 = vpop.f32.mrf.mxu1 }
  0xe6   :  { %v193_v8 = vadd.f32 %v594_v6, %v518_v41  ;;  %619 = vmatprep.mubr.bf16.mxu1 %v230_v4  ;;  %v220_v14 = vmax.f32 %v182_v7, 0.0 }
  0xe7   :  { %v184_v10 = vpop.f32.mrf.mxu1  ;;  %620 = vmatmul.mubr.bf16.gmra.mxu1 %v231_v5 }
  0xe8   :  { %v185_v11 = vadd.f32 %v518_v41, %v184_v10  ;;  %v223_v12 = vmax.f32 %v193_v8, 0.0 }
  0xe9   :  { %v597_v13 = vpop.f32.mrf.mxu1 }
  0xea   :  { %v221_v15 = vmax.f32 %v185_v11, 0.0  ;;  %v233_v19 = vpack.c.bf16 %v223_v12, %v222_v16  ;;  %v206_v23 = vadd.f32 %v597_v13, %v518_v41 }
  0xeb   :  { %v197_v17 = vpop.f32.mrf.mxu1 }
  0xec   :  { %v232_v18 = vpack.c.bf16 %v221_v15, %v220_v14  ;;  %v198_v21 = vadd.f32 %v518_v41, %v197_v17  ;;  %v226_v29 = vmax.f32 %v206_v23, 0.0 }
  0xed   :  { %v598_v20 = vpop.f32.mrf.mxu1 }
  0xee   :  { %v209_v22 = vadd.f32 %v598_v20, %v518_v41  ;;  %623 = vmatprep.mubr.bf16.mxu1 %v232_v18  ;;  %v224_v27 = vmax.f32 %v198_v21, 0.0 }
  0xef   :  { %v200_v24 = vpop.f32.mrf.mxu1  ;;  %624 = vmatmul.mubr.bf16.gmra.mxu1 %v233_v19 }
  0xf0   :  { %v201_v25 = vadd.f32 %v518_v41, %v200_v24  ;;  %v227_v26 = vmax.f32 %v209_v22, 0.0 }
  0xf2   :  { %v225_v28 = vmax.f32 %v201_v25, 0.0  ;;  %v235_v31 = vpack.c.bf16 %v227_v26, %v226_v29 }
  0xf4   :  { %v234_v30 = vpack.c.bf16 %v225_v28, %v224_v27 }
  0xf6   :  { %627 = vmatprep.mubr.bf16.mxu1 %v234_v30 }
  0xf7   :  { %628 = vmatmul.mubr.bf16.gmra.mxu1 %v235_v31 }
 0x19f   :  { %v617_v36 = vpop.f32.mrf.mxu1 }
 0x1a0   :  { %v350_v39 = vadd.f32 %v617_v36, %v815_v37 }
 0x1a1   :  { %v341_v38 = vpop.f32.mrf.mxu1 }
 0x1a2   :  { %v342_v41 = vadd.f32 %v815_v37, %v341_v38  ;;  %v406_v44 = vmax.f32 %v350_v39, 0.0  ;;  %v420_v38 = vld [vmem:[%s867_s5] sm:$0x1]  ;;  %v435_v39 = vlaneseq }
 0x1a3   :  { %v618_v40 = vpop.f32.mrf.mxu1 }
 0x1a4   :  { %v353_v42 = vadd.f32 %v618_v40, %v815_v37  ;;  %v404_v48 = vmax.f32 %v342_v41, 0.0  ;;  %v436_v40 = vshrl.u32 %v435_v39, 7 }
 0x1a5   :  { %v344_v43 = vpop.f32.mrf.mxu1 }
 0x1a6   :  { %v407_v45 = vmax.f32 %v353_v42, 0.0  ;;  %v345_v46 = vadd.f32 %v815_v37, %v344_v43  ;;  %v437_v41 = vsub.s32 0, %v436_v40  ;;  %v433_v42 = vpop.permute.xlu0 %432 }
 0x1a7   :  { %v621_v47 = vpop.f32.mrf.mxu1 }
 0x1a8   :  { %v821_v49 = vpack.c.bf16 %v407_v45, %v406_v44  ;;  %v405_v50 = vmax.f32 %v345_v46, 0.0  ;;  %v366_v23 = vadd.f32 %v621_v47, %v815_v37  ;;  %v438_v43 = vrot.slane %v433_v42, %v437_v41 }
 0x1a9   :  { %v357_v51 = vpop.f32.mrf.mxu1 }
 0x1aa   :  { %v823_v52 = vpack.c.bf16 %v405_v50, %v404_v48  ;;  %v410_v26 = vmax.f32 %v366_v23, 0.0  ;;  %v358_v29 = vadd.f32 %v815_v37, %v357_v51  ;;  %v447_v36 = vsel %vm439_vm4, %v821_v49, 0 }
 0x1ab   :  { %v622_v53 = vpop.f32.mrf.mxu1 }
 0x1ac   :  { %v369_v21 = vadd.f32 %v622_v53, %v815_v37  ;;  %v408_v33 = vmax.f32 %v358_v29, 0.0 }
 0x1ad   :  { %v360_v54 = vpop.f32.mrf.mxu1 }
 0x1ae   :  { %v411_v24 = vmax.f32 %v369_v21, 0.0  ;;  %v361_v28 = vadd.f32 %v815_v37, %v360_v54 }
 0x1af   :  { %v625_v55 = vpop.f32.mrf.mxu1 }
 0x1b0   :  { %v382_v11 = vadd.f32 %v625_v55, %v815_v37  ;;  %v424_v27 = vpack.c.bf16 %v411_v24, %v410_v26  ;;  %v409_v30 = vmax.f32 %v361_v28, 0.0 }
 0x1b1   :  { %v373_v56 = vpop.f32.mrf.mxu1 }
 0x1b2   :  { %v414_v14 = vmax.f32 %v382_v11, 0.0  ;;  %v374_v17 = vadd.f32 %v815_v37, %v373_v56  ;;  %v453_v31 = vsel %vm439_vm4, %v424_v27, 0  ;;  %v423_v34 = vpack.c.bf16 %v409_v30, %v408_v33 }
 0x1b3   :  { %v626_v57 = vpop.f32.mrf.mxu1 }
 0x1b4   :  { %v385_v9 = vadd.f32 %v626_v57, %v815_v37  ;;  %v412_v20 = vmax.f32 %v374_v17, 0.0  ;;  %v450_v35 = vsel %vm439_vm4, %v423_v34, 0 }
 0x1b5   :  { %v376_v58 = vpop.f32.mrf.mxu1 }
 0x1b6   :  { %v415_v12 = vmax.f32 %v385_v9, 0.0  ;;  %v377_v16 = vadd.f32 %v815_v37, %v376_v58 }
 0x1b7   :  { %v629_v59 = vpop.f32.mrf.mxu1 }
 0x1b8   :  { %v398_v61 = vadd.f32 %v629_v59, %v815_v37  ;;  %v426_v15 = vpack.c.bf16 %v415_v12, %v414_v14  ;;  %v413_v18 = vmax.f32 %v377_v16, 0.0 }
 0x1b9   :  { %v389_v60 = vpop.f32.mrf.mxu1 }
 0x1ba   :  { %v418_v1 = vmax.f32 %v398_v61, 0.0  ;;  %v390_v4 = vadd.f32 %v815_v37, %v389_v60  ;;  %v459_v19 = vsel %vm439_vm4, %v426_v15, 0  ;;  %v425_v22 = vpack.c.bf16 %v413_v18, %v412_v20 }
 0x1bb   :  { %v630_v62 = vpop.f32.mrf.mxu1 }
 0x1bc   :  { %v401_v63 = vadd.f32 %v630_v62, %v815_v37  ;;  %v416_v8 = vmax.f32 %v390_v4, 0.0  ;;  %v456_v25 = vsel %vm439_vm4, %v425_v22, 0 }
 0x1bd   :  { %v392_v0 = vpop.f32.mrf.mxu1 }
 0x1be   :  { %v419_v2 = vmax.f32 %v401_v63, 0.0  ;;  %v393_v3 = vadd.f32 %v815_v37, %v392_v0  ;;  %v444_v37 = vsel %vm439_vm4, %v823_v52, 0 }
 0x1c0   :  { %v428_v5 = vpack.c.bf16 %v419_v2, %v418_v1  ;;  %v417_v6 = vmax.f32 %v393_v3, 0.0 }
 0x1c2   :  { %v465_v7 = vsel %vm439_vm4, %v428_v5, 0  ;;  %v427_v10 = vpack.c.bf16 %v417_v6, %v416_v8 }
 0x1c3   :  { %632 = vmatpush3.bf16.xpose.msra.mxu0 %v465_v7 }
 0x1c4   :  { %633 = vmatprep.subr.bf16.mxu0 %v672_v32  ;;  %v462_v13 = vsel %vm439_vm4, %v427_v10, 0 }
 0x1cb   :  { %634 = vmatpush3.bf16.xpose.msra.mxu0 %v462_v13 }
 0x1cc   :  { %635 = vmatprep.subr.bf16.mxu0 %v672_v32 }
 0x1d3   :  { %636 = vmatpush3.bf16.xpose.msra.mxu0 %v459_v19 }
 0x1d4   :  { %637 = vmatprep.subr.bf16.mxu0 %v672_v32 }
 0x1db   :  { %638 = vmatpush3.bf16.xpose.msra.mxu0 %v456_v25 }
 0x1dc   :  { %639 = vmatprep.subr.bf16.mxu0 %v672_v32 }
 0x1e3   :  { %640 = vmatpush3.bf16.xpose.msra.mxu0 %v453_v31 }
 0x1e4   :  { %641 = vmatprep.subr.bf16.mxu0 %v672_v32 }
 0x1eb   :  { %642 = vmatpush3.bf16.xpose.msra.mxu0 %v450_v35 }
 0x1ec   :  { %643 = vmatprep.subr.bf16.mxu0 %v672_v32 }
 0x1f3   :  { %644 = vmatpush3.bf16.xpose.msra.mxu0 %v447_v36 }
 0x1f4   :  { %645 = vmatprep.subr.bf16.mxu0 %v672_v32 }
 0x1fb   :  { %646 = vmatpush3.bf16.xpose.msra.mxu0 %v444_v37 }
 0x202   :  { %648 = vmatmul.mubr.msk.bf16.vlgmr.msra.gmra.mxu0 %vm439_vm4, %v420_v38 }
 0x2c2   :  { %v501_v44 = vpop.f32.mrf.mxu0 }
 0x2c3   :  { %v502_v45 = vadd.f32 %v501_v44, %v438_v43 }
 0x2c4   :  { %v649_v46 = vpop.f32.mrf.mxu0 }
 0x2c5   :  { %v540_v47 = vmul.f32 -1.442695, %v502_v45 }
 0x2c6   :  { %v504_v32 = vpop.f32.mrf.mxu0 }
 0x2c7   :  { %667 = vpow2.f32 %v540_v47 }
 0x2c8   :  { %v650_v48 = vpop.f32.mrf.mxu0 }
 0x2d4   :  { %v668_v49 = vpop.eup %667 }
 0x2d5   :  { %v510_v50 = vadd.f32 1.0, %v668_v49 }
 0x2d7   :  { %669 = vrcp.f32 %v510_v50 }
 0x2e4   :  { %v670_v51 = vpop.eup %669 }
 0x2e5   :  { %513 = vst [vmem:[%s868_s7] sm:$0x1] %v670_v51 }

</bundles_post_ra>
